<compile_context>
chip_gen: v7x
topology: tpu7x:2x2x1
jax: 0.10.0
libtpu: 0.0.40
codegen_flags: <defaults>
</compile_context>

<pallas_src>
import functools
import math

import numpy as np
import jax
import jax.numpy as jnp
from jax.experimental import pallas as pl
from jax.experimental.pallas import tpu as pltpu

_LANE = 128


def _round_up(x, m):
    return ((x + m - 1) // m) * m


def _cpe_kernel(x_ref, w_ref, b_ref, m_ref, o_ref, pad_ref, *, K, W, left):
    """One (batch, channel-tile) step of residual + depthwise KxK conv.

    x_ref:   (TC, N)        input block; lane = flattened H*W spatial
    w_ref:   (K*K, TC, 1)   f32 depthwise taps, leading index = ki*K + kj
    b_ref:   (TC, 1)        f32 per-channel bias
    m_ref:   (K, 1, N)      f32 horizontal-validity mask, row kj <-> dw = kj - K//2
    o_ref:   (TC, N)        output block
    pad_ref: (TC, Np)       f32 scratch; block sits at lane offset `left` (=128)
                            with zero halos on both sides
    """
    TC, N = x_ref.shape
    Np = pad_ref.shape[1]
    p = K // 2

    # Load the block exactly once (reused for residual, pad store, centre tap).
    xv = x_ref[...].astype(jnp.float32)

    # Zero the halos, then place the (cast-once) interior at `left`.  All three
    # stores start at 128-aligned lane offsets; the right-halo store starts at
    # the last aligned lane <= left+N and is overwritten by the interior store.
    right0 = left + (N // _LANE) * _LANE
    pad_ref[:, 0:left] = jnp.zeros((TC, left), jnp.float32)
    pad_ref[:, right0:] = jnp.zeros((TC, Np - right0), jnp.float32)
    pad_ref[:, left:left + N] = xv

    acc = xv                                  # residual: y = x + conv(x) + bias
    for kj in range(K):                       # horizontal offset outer: mask hoisted per kj
        dw = kj - p
        mrow = m_ref[kj] if dw != 0 else None     # (1, N)
        for ki in range(K):
            dh = ki - p
            d = dh * W + dw
            # Centre tap reuses the already-loaded block (no scratch read).
            win = xv if d == 0 else pad_ref[:, left + d:left + d + N]
            if mrow is not None:
                win = win * mrow                  # zero the row-wrap positions
            wt = w_ref[ki * K + kj]               # (TC, 1) per-channel tap weight
            acc = acc + win * wt
    o_ref[...] = (acc + b_ref[...]).astype(o_ref.dtype)


def _plan_channel_tiling(B, C, N, Np, itemsize):
    """Pick the channel tile TC and a generation-aware VMEM limit."""

    def step_bytes(tc):
        io = tc * N * itemsize              # one input or output block
        scratch = tc * Np * 4               # persistent f32 padded scratch
        work = 4 * tc * N * 4               # xv / acc / window f32 temporaries
        return 4 * io + scratch + work      # in + out double-buffered + rest

    # Candidate tiles: multiples of 8 dividing C (BlockSpec sublane rule),
    # plus C itself (full extent is always legal).
    cands = sorted({c for c in range(8, C + 1, 8) if C % c == 0} | {C},
                   reverse=True)

    # Generation-aware budget: 128 MiB VMEM parts (v5e/v6e) get large tiles,
    # v7x (64 MiB / TensorCore) keeps a ~22 MiB step budget and a <=48 MiB cap.
    try:
        cap = int(getattr(pltpu.get_tpu_info(), "vmem_capacity_bytes", 0))
    except Exception:
        cap = 0
    if cap >= 100 * 1024 * 1024:
        budget, limit_cap = 48 * 1024 * 1024, 100 * 1024 * 1024
    else:
        budget, limit_cap = 22 * 1024 * 1024, 48 * 1024 * 1024

    tc = cands[-1]
    for c in cands:
        if step_bytes(c) <= budget:
            tc = c
            break
    # Guarantee >= 2 total grid steps when possible so both v7x TensorCores
    # (and the DMA pipeline) get work.
    if B * (C // tc) < 2:
        for c in cands:
            if C // c >= 2 and step_bytes(c) <= budget:
                tc = c
                break
    # TODO(synk): for huge H*W with tiny C even the smallest channel tile can
    # exceed the budget; add a spatial tile grid axis (with a p-row halo).
    vmem_limit = int(min(limit_cap, max(32 * 1024 * 1024, 2 * step_bytes(tc))))
    return tc, vmem_limit


def conditional_positional_encoding(x, weight, bias, kernel_size):
    """x: (B, N, C); weight: (C, 1, K, K) PyTorch depthwise layout; bias: (C,)."""
    B, N, C = x.shape
    side = int(math.isqrt(N))
    assert side * side == N, "num_node must be a perfect square"
    K = int(kernel_size)
    assert K % 2 == 1, "kernel_size must be odd (padding = K//2 preserves size)"
    p = K // 2
    H = W = side
    del H

    # The module's x.reshape(B, C, H, W) is a row-major reinterpretation of
    # (B, N, C): (B, C, N) is a FREE view — no transpose / tile / pad pass.
    x_v = x.reshape(B, C, N)

    # Tiny per-channel parameters, laid out so the kernel indexes them with a
    # static leading tap index (no misaligned in-kernel parameter slicing):
    #   weight (C,1,K,K) -> (K*K, C, 1);  bias (C,) -> (C, 1)
    w_v = jnp.transpose(weight.reshape(C, K * K), (1, 0)).reshape(K * K, C, 1)
    w_v = w_v.astype(jnp.float32)
    b_v = bias.reshape(C, 1).astype(jnp.float32)

    # Horizontal edge masks: tap column kj (dw = kj - p) is valid at flattened
    # position s iff 0 <= (s % W) + dw < W.  Vertical edges are handled by the
    # zero halos of the in-kernel padded scratch.
    scol = np.arange(N) % W
    m_np = np.stack([((scol + (kj - p)) >= 0) & ((scol + (kj - p)) < W)
                     for kj in range(K)]).astype(np.float32)
    m_v = jnp.asarray(m_np.reshape(K, 1, N))

    halo = p * W + p                        # max |flattened tap offset|
    left = _LANE                            # 128-aligned left halo
    Np = left + _round_up(N + halo, _LANE)  # right zeros cover the halo

    itemsize = jnp.dtype(x.dtype).itemsize
    TC, vmem_limit = _plan_channel_tiling(B, C, N, Np, itemsize)
    grid = (B, C // TC)

    out_v = pl.pallas_call(
        functools.partial(_cpe_kernel, K=K, W=W, left=left),
        out_shape=jax.ShapeDtypeStruct((B, C, N), x.dtype),
        grid=grid,
        in_specs=[
            # activation block: batch squeezed, channel tile, full flat spatial
            pl.BlockSpec((None, TC, N), lambda b, ct: (b, ct, 0)),
            # parameters indexed by the channel tile only (VMEM-resident,
            # re-DMA'd only when the channel tile changes)
            pl.BlockSpec((K * K, TC, 1), lambda b, ct: (0, ct, 0)),
            pl.BlockSpec((TC, 1), lambda b, ct: (ct, 0)),
            pl.BlockSpec((K, 1, N), lambda b, ct: (0, 0, 0)),
        ],
        out_specs=pl.BlockSpec((None, TC, N), lambda b, ct: (b, ct, 0)),
        scratch_shapes=[pltpu.VMEM((TC, Np), jnp.float32)],
        # NOTE: default 2-deep pipelining; bump in_specs[0] to
        # pipeline_mode=pl.Buffered(3) only if xprof shows exposed input DMA.
        compiler_params=pltpu.CompilerParams(
            dimension_semantics=("parallel", "parallel"),
            vmem_limit_bytes=vmem_limit,
        ),
    )(x_v, w_v, b_v, m_v)

    # Row-major reshape back to (B, N, C) — also free.
    return out_v.reshape(B, N, C)


def _reference(x, weight, bias, kernel_size):
    """Pure-JAX reference matching the PyTorch forward exactly."""
    B, N, C = x.shape
    side = int(math.isqrt(N))
    p = kernel_size // 2
    x4 = x.reshape(B, -1, side, side)                       # NCHW (row-major)
    conv = jax.lax.conv_general_dilated(
        x4, weight,
        window_strides=(1, 1),
        padding=[(p, p), (p, p)],
        dimension_numbers=("NCHW", "OIHW", "NCHW"),
        feature_group_count=C,
    ) + bias.reshape(1, C, 1, 1)
    return (x4 + conv).reshape(B, N, -1)


if __name__ == "__main__":
    B = 2
    num_node = 16          # -> 4x4 spatial grid
    in_channels = 32
    kernel_size = 3

    key = jax.random.PRNGKey(0)
    kx, kw, kb = jax.random.split(key, 3)

    x = jax.random.normal(kx, (B, num_node, in_channels), dtype=jnp.float32)
    # Depthwise conv params, PyTorch shape (out_ch, in_ch/groups, K, K) = (C,1,K,K)
    weight = jax.random.normal(
        kw, (in_channels, 1, kernel_size, kernel_size), dtype=jnp.float32) * 0.1
    bias = jax.random.normal(kb, (in_channels,), dtype=jnp.float32) * 0.1

    fn = jax.jit(functools.partial(conditional_positional_encoding,
                                   kernel_size=kernel_size))
    out = jax.block_until_ready(fn(x, weight, bias))

    ref = _reference(x, weight, bias, kernel_size)
    assert out.shape == (B, num_node, in_channels)
    assert jnp.allclose(out, ref, atol=1e-5, rtol=1e-5), "mismatch vs reference"

    print("KERNEL_OK")
</pallas_src>

<mosaic_0001>
module attributes {stable_mosaic.version = 11 : i64} {
  func.func @_cpe_kernel(%arg0: i32, %arg1: i32, %arg2: memref<1x32x16xf32, #tpu.memory_space<vmem>>, %arg3: memref<9x32x1xf32, #tpu.memory_space<vmem>>, %arg4: memref<32x1xf32, #tpu.memory_space<vmem>>, %arg5: memref<3x1x16xf32, #tpu.memory_space<vmem>>, %arg6: memref<1x32x16xf32, #tpu.memory_space<vmem>>, %arg7: memref<32x256xf32, #tpu.memory_space<vmem>>) attributes {dimension_semantics = [#tpu.dimension_semantics<parallel>, #tpu.dimension_semantics<parallel>], iteration_bounds = array<i64: 2, 1>, scalar_prefetch = 0 : i64, scratch_operands = 1 : i64, tpu.core_type = #tpu.core_type<tc>, window_params = [{transform_indices = @transform_0, window_bounds = array<i64: 1, 32, 16>}, {transform_indices = @transform_1, window_bounds = array<i64: 9, 32, 1>}, {transform_indices = @transform_2, window_bounds = array<i64: 32, 1>}, {pipeline_mode = #tpu.pipeline_mode<synchronous>, transform_indices = @transform_3, window_bounds = array<i64: 3, 1, 16>}, {transform_indices = @transform_4, window_bounds = array<i64: 1, 32, 16>}]} {
    %c0 = arith.constant 0 : index
    %c0_0 = arith.constant 0 : index
    %c0_1 = arith.constant 0 : index
    %0 = vector.load %arg2[%c0, %c0_0, %c0_1] : memref<1x32x16xf32, #tpu.memory_space<vmem>>, vector<1x32x16xf32>
    %1 = vector.shape_cast %0 : vector<1x32x16xf32> to vector<32x16xf32>
    %cst = arith.constant 0.000000e+00 : f32
    %2 = vector.broadcast %cst : f32 to vector<32x128xf32>
    %c0_2 = arith.constant 0 : index
    %c0_3 = arith.constant 0 : index
    %3 = vector.load %arg7[%c0_2, %c0_3] : memref<32x256xf32, #tpu.memory_space<vmem>>, vector<32x128xf32>
    tpu.vector_store %arg7[%c0_2, %c0_3], %2 {strides = array<i32>} : memref<32x256xf32, #tpu.memory_space<vmem>>, vector<32x128xf32>,
    %cst_4 = arith.constant 0.000000e+00 : f32
    %4 = vector.broadcast %cst_4 : f32 to vector<32x128xf32>
    %c0_5 = arith.constant 0 : index
    %c128 = arith.constant 128 : index
    %5 = vector.load %arg7[%c0_5, %c128] : memref<32x256xf32, #tpu.memory_space<vmem>>, vector<32x128xf32>
    tpu.vector_store %arg7[%c0_5, %c128], %4 {strides = array<i32>} : memref<32x256xf32, #tpu.memory_space<vmem>>, vector<32x128xf32>,
    %c0_6 = arith.constant 0 : index
    %c128_7 = arith.constant 128 : index
    %6 = vector.load %arg7[%c0_6, %c128_7] : memref<32x256xf32, #tpu.memory_space<vmem>>, vector<32x16xf32>
    tpu.vector_store %arg7[%c0_6, %c128_7], %1 {strides = array<i32>} : memref<32x256xf32, #tpu.memory_space<vmem>>, vector<32x16xf32>,
    %c0_8 = arith.constant 0 : index
    %c0_9 = arith.constant 0 : index
    %c0_10 = arith.constant 0 : index
    %7 = vector.load %arg5[%c0_8, %c0_9, %c0_10] : memref<3x1x16xf32, #tpu.memory_space<vmem>>, vector<1x1x16xf32>
    %8 = vector.shape_cast %7 : vector<1x1x16xf32> to vector<1x16xf32>
    %c0_11 = arith.constant 0 : index
    %c123 = arith.constant 123 : index
    %9 = vector.load %arg7[%c0_11, %c123] : memref<32x256xf32, #tpu.memory_space<vmem>>, vector<32x16xf32>
    %10 = vector.broadcast %8 : vector<1x16xf32> to vector<32x16xf32>
    %11 = arith.mulf %9, %10 : vector<32x16xf32>
    %c0_12 = arith.constant 0 : index
    %c0_13 = arith.constant 0 : index
    %c0_14 = arith.constant 0 : index
    %12 = vector.load %arg3[%c0_12, %c0_13, %c0_14] : memref<9x32x1xf32, #tpu.memory_space<vmem>>, vector<1x32x1xf32>
    %13 = vector.shape_cast %12 : vector<1x32x1xf32> to vector<32x1xf32>
    %14 = vector.broadcast %13 : vector<32x1xf32> to vector<32x16xf32>
    %15 = arith.mulf %11, %14 : vector<32x16xf32>
    %16 = arith.addf %1, %15 : vector<32x16xf32>
    %c0_15 = arith.constant 0 : index
    %c127 = arith.constant 127 : index
    %17 = vector.load %arg7[%c0_15, %c127] : memref<32x256xf32, #tpu.memory_space<vmem>>, vector<32x16xf32>
    %18 = vector.broadcast %8 : vector<1x16xf32> to vector<32x16xf32>
    %19 = arith.mulf %17, %18 : vector<32x16xf32>
    %c3 = arith.constant 3 : index
    %c0_16 = arith.constant 0 : index
    %c0_17 = arith.constant 0 : index
    %20 = vector.load %arg3[%c3, %c0_16, %c0_17] : memref<9x32x1xf32, #tpu.memory_space<vmem>>, vector<1x32x1xf32>
    %21 = vector.shape_cast %20 : vector<1x32x1xf32> to vector<32x1xf32>
    %22 = vector.broadcast %21 : vector<32x1xf32> to vector<32x16xf32>
    %23 = arith.mulf %19, %22 : vector<32x16xf32>
    %24 = arith.addf %16, %23 : vector<32x16xf32>
    %c0_18 = arith.constant 0 : index
    %c131 = arith.constant 131 : index
    %25 = vector.load %arg7[%c0_18, %c131] : memref<32x256xf32, #tpu.memory_space<vmem>>, vector<32x16xf32>
    %26 = vector.broadcast %8 : vector<1x16xf32> to vector<32x16xf32>
    %27 = arith.mulf %25, %26 : vector<32x16xf32>
    %c6 = arith.constant 6 : index
    %c0_19 = arith.constant 0 : index
    %c0_20 = arith.constant 0 : index
    %28 = vector.load %arg3[%c6, %c0_19, %c0_20] : memref<9x32x1xf32, #tpu.memory_space<vmem>>, vector<1x32x1xf32>
    %29 = vector.shape_cast %28 : vector<1x32x1xf32> to vector<32x1xf32>
    %30 = vector.broadcast %29 : vector<32x1xf32> to vector<32x16xf32>
    %31 = arith.mulf %27, %30 : vector<32x16xf32>
    %32 = arith.addf %24, %31 : vector<32x16xf32>
    %c0_21 = arith.constant 0 : index
    %c124 = arith.constant 124 : index
    %33 = vector.load %arg7[%c0_21, %c124] : memref<32x256xf32, #tpu.memory_space<vmem>>, vector<32x16xf32>
    %c1 = arith.constant 1 : index
    %c0_22 = arith.constant 0 : index
    %c0_23 = arith.constant 0 : index
    %34 = vector.load %arg3[%c1, %c0_22, %c0_23] : memref<9x32x1xf32, #tpu.memory_space<vmem>>, vector<1x32x1xf32>
    %35 = vector.shape_cast %34 : vector<1x32x1xf32> to vector<32x1xf32>
    %36 = vector.broadcast %35 : vector<32x1xf32> to vector<32x16xf32>
    %37 = arith.mulf %33, %36 : vector<32x16xf32>
    %38 = arith.addf %32, %37 : vector<32x16xf32>
    %c4 = arith.constant 4 : index
    %c0_24 = arith.constant 0 : index
    %c0_25 = arith.constant 0 : index
    %39 = vector.load %arg3[%c4, %c0_24, %c0_25] : memref<9x32x1xf32, #tpu.memory_space<vmem>>, vector<1x32x1xf32>
    %40 = vector.shape_cast %39 : vector<1x32x1xf32> to vector<32x1xf32>
    %41 = vector.broadcast %40 : vector<32x1xf32> to vector<32x16xf32>
    %42 = arith.mulf %1, %41 : vector<32x16xf32>
    %43 = arith.addf %38, %42 : vector<32x16xf32>
    %c0_26 = arith.constant 0 : index
    %c132 = arith.constant 132 : index
    %44 = vector.load %arg7[%c0_26, %c132] : memref<32x256xf32, #tpu.memory_space<vmem>>, vector<32x16xf32>
    %c7 = arith.constant 7 : index
    %c0_27 = arith.constant 0 : index
    %c0_28 = arith.constant 0 : index
    %45 = vector.load %arg3[%c7, %c0_27, %c0_28] : memref<9x32x1xf32, #tpu.memory_space<vmem>>, vector<1x32x1xf32>
    %46 = vector.shape_cast %45 : vector<1x32x1xf32> to vector<32x1xf32>
    %47 = vector.broadcast %46 : vector<32x1xf32> to vector<32x16xf32>
    %48 = arith.mulf %44, %47 : vector<32x16xf32>
    %49 = arith.addf %43, %48 : vector<32x16xf32>
    %c2 = arith.constant 2 : index
    %c0_29 = arith.constant 0 : index
    %c0_30 = arith.constant 0 : index
    %50 = vector.load %arg5[%c2, %c0_29, %c0_30] : memref<3x1x16xf32, #tpu.memory_space<vmem>>, vector<1x1x16xf32>
    %51 = vector.shape_cast %50 : vector<1x1x16xf32> to vector<1x16xf32>
    %c0_31 = arith.constant 0 : index
    %c125 = arith.constant 125 : index
    %52 = vector.load %arg7[%c0_31, %c125] : memref<32x256xf32, #tpu.memory_space<vmem>>, vector<32x16xf32>
    %53 = vector.broadcast %51 : vector<1x16xf32> to vector<32x16xf32>
    %54 = arith.mulf %52, %53 : vector<32x16xf32>
    %c2_32 = arith.constant 2 : index
    %c0_33 = arith.constant 0 : index
    %c0_34 = arith.constant 0 : index
    %55 = vector.load %arg3[%c2_32, %c0_33, %c0_34] : memref<9x32x1xf32, #tpu.memory_space<vmem>>, vector<1x32x1xf32>
    %56 = vector.shape_cast %55 : vector<1x32x1xf32> to vector<32x1xf32>
    %57 = vector.broadcast %56 : vector<32x1xf32> to vector<32x16xf32>
    %58 = arith.mulf %54, %57 : vector<32x16xf32>
    %59 = arith.addf %49, %58 : vector<32x16xf32>
    %c0_35 = arith.constant 0 : index
    %c129 = arith.constant 129 : index
    %60 = vector.load %arg7[%c0_35, %c129] : memref<32x256xf32, #tpu.memory_space<vmem>>, vector<32x16xf32>
    %61 = vector.broadcast %51 : vector<1x16xf32> to vector<32x16xf32>
    %62 = arith.mulf %60, %61 : vector<32x16xf32>
    %c5 = arith.constant 5 : index
    %c0_36 = arith.constant 0 : index
    %c0_37 = arith.constant 0 : index
    %63 = vector.load %arg3[%c5, %c0_36, %c0_37] : memref<9x32x1xf32, #tpu.memory_space<vmem>>, vector<1x32x1xf32>
    %64 = vector.shape_cast %63 : vector<1x32x1xf32> to vector<32x1xf32>
    %65 = vector.broadcast %64 : vector<32x1xf32> to vector<32x16xf32>
    %66 = arith.mulf %62, %65 : vector<32x16xf32>
    %67 = arith.addf %59, %66 : vector<32x16xf32>
    %c0_38 = arith.constant 0 : index
    %c133 = arith.constant 133 : index
    %68 = vector.load %arg7[%c0_38, %c133] : memref<32x256xf32, #tpu.memory_space<vmem>>, vector<32x16xf32>
    %69 = vector.broadcast %51 : vector<1x16xf32> to vector<32x16xf32>
    %70 = arith.mulf %68, %69 : vector<32x16xf32>
    %c8 = arith.constant 8 : index
    %c0_39 = arith.constant 0 : index
    %c0_40 = arith.constant 0 : index
    %71 = vector.load %arg3[%c8, %c0_39, %c0_40] : memref<9x32x1xf32, #tpu.memory_space<vmem>>, vector<1x32x1xf32>
    %72 = vector.shape_cast %71 : vector<1x32x1xf32> to vector<32x1xf32>
    %73 = vector.broadcast %72 : vector<32x1xf32> to vector<32x16xf32>
    %74 = arith.mulf %70, %73 : vector<32x16xf32>
    %75 = arith.addf %67, %74 : vector<32x16xf32>
    %c0_41 = arith.constant 0 : index
    %c0_42 = arith.constant 0 : index
    %76 = vector.load %arg4[%c0_41, %c0_42] : memref<32x1xf32, #tpu.memory_space<vmem>>, vector<32x1xf32>
    %77 = vector.broadcast %76 : vector<32x1xf32> to vector<32x16xf32>
    %78 = arith.addf %75, %77 : vector<32x16xf32>
    %c0_43 = arith.constant 0 : index
    %c0_44 = arith.constant 0 : index
    %c0_45 = arith.constant 0 : index
    %79 = vector.load %arg6[%c0_43, %c0_44, %c0_45] : memref<1x32x16xf32, #tpu.memory_space<vmem>>, vector<1x32x16xf32>
    %80 = vector.shape_cast %79 : vector<1x32x16xf32> to vector<32x16xf32>
    %81 = vector.shape_cast %78 : vector<32x16xf32> to vector<1x32x16xf32>
    tpu.vector_store %arg6[%c0_43, %c0_44, %c0_45], %81 {strides = array<i32>} : memref<1x32x16xf32, #tpu.memory_space<vmem>>, vector<1x32x16xf32>,
    return
  }
  func.func @transform_0(%arg0: i32, %arg1: i32) -> (i32, i32, i32) {
    %c0_i32 = arith.constant 0 : i32
    %c0_i32_0 = arith.constant 0 : i32
    return %arg0, %arg1, %c0_i32 : i32, i32, i32
  }
  func.func @transform_1(%arg0: i32, %arg1: i32) -> (i32, i32, i32) {
    %c0_i32 = arith.constant 0 : i32
    %c0_i32_0 = arith.constant 0 : i32
    %c0_i32_1 = arith.constant 0 : i32
    return %c0_i32, %arg1, %c0_i32_0 : i32, i32, i32
  }
  func.func @transform_2(%arg0: i32, %arg1: i32) -> (i32, i32) {
    %c0_i32 = arith.constant 0 : i32
    %c0_i32_0 = arith.constant 0 : i32
    return %arg1, %c0_i32 : i32, i32
  }
  func.func @transform_3(%arg0: i32, %arg1: i32) -> (i32, i32, i32) {
    %c0_i32 = arith.constant 0 : i32
    %c0_i32_0 = arith.constant 0 : i32
    %c0_i32_1 = arith.constant 0 : i32
    %c0_i32_2 = arith.constant 0 : i32
    return %c0_i32, %c0_i32_0, %c0_i32_1 : i32, i32, i32
  }
  func.func @transform_4(%arg0: i32, %arg1: i32) -> (i32, i32, i32) {
    %c0_i32 = arith.constant 0 : i32
    %c0_i32_0 = arith.constant 0 : i32
    return %arg0, %arg1, %c0_i32 : i32, i32, i32
  }
}

</mosaic_0001>

<bundles_post_ra>
// kernel: conditional_positional_encoding.1
= control target key start
LH: loop header
LB: loop body
LE: loop exit
PB: predicated region body
PF: predicated region fallthrough
CT: control target
= control target key end

     0   :  { %s1175_s15 = smov 0   ;;  %s1177_s16 = smov 0   ;;  %s1482_s0 = inlined_call_operand.vmem [shape: f32[2,32,16], index: 0, kind: input, shape index: {}]   ;;  %s1483_s1 = inlined_call_operand.vmem [shape: f32[9,32,1], index: 1, kind: input, shape index: {}]   ;;  %s1484_s2 = inlined_call_operand.vmem [shape: f32[32,1], index: 2, kind: input, shape index: {}]   ;;  %s1485_s3 = inlined_call_operand.vmem [shape: f32[3,1,16], index: 3, kind: input, shape index: {}]   ;;  %s1486_s4 = inlined_call_operand.vmem [shape: f32[2,32,16], index: 4, kind: output, shape index: {}]  }
   0x1   :  { %s1179_s17 = smov 0  }
   0x2 LB: > { %s26_s18 = sadd.s32 1, %s1134_s16  ;;  %p1036_p0 = scmp.ge.s32.totalorder %s1138_s17, 1  ;;  %s1138_s17 = sphi %s1179_s17, %s14_s17   ;;  %s1134_s16 = sphi %s1177_s16, %s1488_s16   ;;  %s1130_s15 = sphi %s1175_s15, %s1487_s15  }
   0x3   : > { %p28_p1 = scmp.ge.s32.totalorder %s26_s18, 2  ;;  %p205_p2 = scmp.lt.s32.totalorder %s1138_s17, 3 }
   0x5   : > { %s1490_s18 = smov (%p28_p1, %s26_s18), 0  ;;  %p206_p3 = pnand %p1036_p0, %p205_p2 }
   0x6   : > { %v1041_v0 = vld [vmem:[%s1485_s3] ss:$0 sm:$0xff] (!%p206_p3)  ;;  %v324_v1 = vld [vmem:[%s1483_s1 + $0x8] sm:$0xff] (!%p206_p3)  ;;  %v1140_v2 = vmov (!%p206_p3), 0   ;;  %s1141_s23 = smov (!%p206_p3), 123   ;;  %v1142_v4 = vmov (!%p206_p3), 0.0  }
   0x7   : > { %209 = sbr.rel (%p206_p3) target bundleno = 440 (0x1b8), region = 36  ;;  %1115 = vset.pattern.permute.xlu1 (!%p206_p3), %v1140_v2  ;;  %312 = vrot.lane.b32.xlu0 (!%p206_p3), %v1041_v0, %s1141_s23  ;;  %v323_v3 = vld [vmem:[%s1483_s1] sm:$0xff] (!%p206_p3)  ;;  %290 = vst [vmem:[#allocation2 + $0x18] sm:$0xff] (!%p206_p3), %v1142_v4  ;;  %289 = vst [vmem:[#allocation2 + $0x8] sm:$0xff] (!%p206_p3), %v1142_v4  ;;  %v325_v5 = vld [vmem:[%s1483_s1 + $0x10] sm:$0xff] (!%p206_p3)  ;;  %p250_p4 = scmp.lt.s32.totalorder (!%p206_p3), %s1130_s15, 1 }
   0x8   : > { %334 = vperm.xlu1 (!%p206_p3), %1115, %v324_v1   ;;  %1114 = vset.pattern.permute.xlu0 (!%p206_p3), %v1140_v2  ;;  %291 = vst [vmem:[#allocation2 + $0x28] sm:$0xff] (!%p206_p3), %v1142_v4  ;;  %292 = vst [vmem:[#allocation2 + $0x38] sm:$0xff] (!%p206_p3), %v1142_v4  ;;  %v326_v6 = vld [vmem:[%s1483_s1 + $0x18] sm:$0xff] (!%p206_p3)  ;;  %s1143_s5 = smov (!%p206_p3), 127   ;;  %v1043_v7 = vld [vmem:[%s1483_s1 + $0x68] sm:$0xff] (!%p206_p3)  ;;  %vm293_vm0 = vcmask (!%p206_p3), 130048  }
   0x9   : > { %v1042_v8 = vld [vmem:[%s1483_s1 + $0x60] sm:$0xff] (!%p206_p3)  ;;  %v1045_v13 = vld [vmem:[%s1483_s1 + $0x78] sm:$0xff] (!%p206_p3)  ;;  %v1044_v14 = vld [vmem:[%s1483_s1 + $0x70] sm:$0xff] (!%p206_p3)  ;;  %s1144_s24 = smov (!%p206_p3), 3   ;;  %s1145_s9 = smov (!%p206_p3), 125   ;;  %vm379_vm1 = vcmask (!%p206_p3), 39936  }
   0xa   : > { %v1046_v15 = vld [vmem:[%s1483_s1 + $0xc0] sm:$0xff] (!%p206_p3)  ;;  %v1048_v16 = vld [vmem:[%s1483_s1 + $0xd0] sm:$0xff] (!%p206_p3)  ;;  %v1047_v17 = vld [vmem:[%s1483_s1 + $0xc8] sm:$0xff] (!%p206_p3)  ;;  %s1146_s22 = smov (!%p206_p3), 1   ;;  %s1147_s25 = smov (!%p206_p3), 5   ;;  %vm460_vm2 = vcmask (!%p206_p3), 7168  }
   0xb   : > { %329 = vperm.xlu0 (!%p206_p3), %1114, %v323_v3   ;;  %v1050_v18 = vld [vmem:[%s1483_s1 + $0x20] sm:$0xff] (!%p206_p3)  ;;  %v1049_v19 = vld [vmem:[%s1483_s1 + $0xd8] sm:$0xff] (!%p206_p3)  ;;  %v1052_v20 = vld [vmem:[%s1483_s1 + $0x30] sm:$0xff] (!%p206_p3)  ;;  %s1148_s26 = smov (!%p206_p3), 4   ;;  %s1149_s7 = smov (!%p206_p3), 124   ;;  %vm586_vm3 = vcmask (!%p206_p3), 31744  }
   0xc   : > { %339 = vperm.xlu1 (!%p206_p3), %1115, %v325_v5   ;;  %v1051_v21 = vld [vmem:[%s1483_s1 + $0x28] sm:$0xff] (!%p206_p3)  ;;  %v1054_v22 = vld [vmem:[%s1483_s1 + $0x80] sm:$0xff] (!%p206_p3)  ;;  %v1053_v23 = vld [vmem:[%s1483_s1 + $0x38] sm:$0xff] (!%p206_p3)  ;;  %vm756_vm4 = vcmask (!%p206_p3), 23552  }
   0xd   : > { %v1058_v24 = vld [vmem:[%s1483_s1 + $0xe0] sm:$0xff] (!%p206_p3)  ;;  %v1055_v25 = vld [vmem:[%s1483_s1 + $0x88] sm:$0xff] (!%p206_p3)  ;;  %v1060_v26 = vld [vmem:[%s1483_s1 + $0xf0] sm:$0xff] (!%p206_p3) }
   0xe   : > { %s1492_s15 = smov (!%p250_p4, %s1130_s15), 1  ;;  %v1059_v27 = vld [vmem:[%s1483_s1 + $0xe8] sm:$0xff]  ;;  %v1064_v28 = vld [vmem:[%s1483_s1 + $0x40] sm:$0xff]  ;;  %v1061_v29 = vld [vmem:[%s1483_s1 + $0xf8] sm:$0xff] }
   0xf   : > { %s1078_s30 = sshll.u32 %s1492_s15, 5  ;;  %392 = vrot.lane.b32.xlu0 %v1041_v0, %s1143_s5  ;;  %v1066_v30 = vld [vmem:[%s1483_s1 + $0x50] sm:$0xff]  ;;  %v1065_v31 = vld [vmem:[%s1483_s1 + $0x48] sm:$0xff]  ;;  %v1068_v32 = vld [vmem:[%s1483_s1 + $0xa0] sm:$0xff] }
  0x10   : > { %s257_s8 = scalar_lea.vmem %s1482_s0, %s1078_s30  ;;  %344 = vperm.xlu1 %1115, %v326_v6   ;;  %v1067_v33 = vld [vmem:[%s1483_s1 + $0x58] sm:$0xff]  ;;  %v1070_v34 = vld [vmem:[%s1483_s1 + $0xb0] sm:$0xff]  ;;  %v1069_v35 = vld [vmem:[%s1483_s1 + $0xa8] sm:$0xff] }
  0x11   : > { %v1224_v9 = vld [vmem:[%s257_s8 + $0x8] sm:$0xff]  ;;  %v1226_v10 = vld [vmem:[%s257_s8] sm:$0xff]  ;;  %v1228_v11 = vld [vmem:[%s257_s8 + $0x10] sm:$0xff] }
  0x12   : > { %295 = vst.msk [vmem:[#allocation2 + $0x18] sm:$0xff] %vm293_vm0, %v1224_v9  ;;  %294 = vst.msk [vmem:[#allocation2 + $0x8] sm:$0xff] %vm293_vm0, %v1226_v10  ;;  %v1236_v12 = vld [vmem:[%s257_s8 + $0x18] sm:$0xff]  ;;  %v1313_v36 = vld [vmem:[%s1485_s3 + $0x2] ss:$0 sm:$0xff] }
  0x13   : > { %415 = vperm.xlu0 %1114, %v1043_v7   ;;  %296 = vst.msk [vmem:[#allocation2 + $0x28] sm:$0xff] %vm293_vm0, %v1228_v11  ;;  %297 = vst.msk [vmem:[#allocation2 + $0x38] sm:$0xff] %vm293_vm0, %v1236_v12  ;;  %v1071_v37 = vld [vmem:[%s1483_s1 + $0xb8] sm:$0xff]  ;;  %v1073_v38 = vld [vmem:[%s1483_s1 + $0x108] sm:$0xff] }
  0x14   : > { %410 = vperm.xlu1 %1115, %v1042_v8   ;;  %v1072_v39 = vld [vmem:[%s1483_s1 + $0x100] sm:$0xff]  ;;  %v1075_v40 = vld [vmem:[%s1483_s1 + $0x118] sm:$0xff]  ;;  %v1074_v41 = vld [vmem:[%s1483_s1 + $0x110] sm:$0xff] }
  0x17   : > { %425 = vperm.xlu0 %1114, %v1045_v13  }
  0x18   : > { %420 = vperm.xlu1 %1115, %v1044_v14  }
  0x19   : > { %v1334_v43 = vld [vmem:[#allocation2 + $0x8] sm:$0xff]  ;;  %v1337_v47 = vld [vmem:[#allocation2 + $0x18] sm:$0xff] }
  0x1a   : > { %v1342_v53 = vld [vmem:[#allocation2 + $0x28] sm:$0xff]  ;;  %v1347_v59 = vld [vmem:[#allocation2 + $0x38] sm:$0xff] }
  0x1b   : > { %487 = vperm.xlu0 %1114, %v1046_v15  }
  0x1c   : > { %473 = vrot.lane.b32.xlu1 %v1041_v0, %s1144_s24 }
  0x1f   : > { %497 = vperm.xlu0 %1114, %v1048_v16  }
  0x20   : > { %492 = vperm.xlu1 %1115, %v1047_v17  }
  0x23   : > { %536 = vperm.xlu0 %1114, %v1050_v18  }
  0x24   : > { %502 = vperm.xlu1 %1115, %v1049_v19  }
  0x27   : > { %546 = vperm.xlu0 %1114, %v1052_v20  }
  0x28   : > { %541 = vperm.xlu1 %1115, %v1051_v21  }
  0x2b   : > { %606 = vperm.xlu0 %1114, %v1054_v22  }
  0x2c   : > { %551 = vperm.xlu1 %1115, %v1053_v23  }
  0x2f   : > { %639 = vperm.xlu0 %1114, %v1058_v24  }
  0x30   : > { %611 = vperm.xlu1 %1115, %v1055_v25  }
  0x33   : > { %649 = vperm.xlu0 %1114, %v1060_v26  }
  0x34   : > { %644 = vperm.xlu1 %1115, %v1059_v27  }
  0x37   : > { %706 = vperm.xlu0 %1114, %v1064_v28  }
  0x38   : > { %654 = vperm.xlu1 %1115, %v1061_v29  }
  0x3b   : > { %716 = vperm.xlu0 %1114, %v1066_v30  }
  0x3c   : > { %711 = vperm.xlu1 %1115, %v1065_v31  }
  0x3f   : > { %783 = vperm.xlu0 %1114, %v1068_v32  }
  0x40   : > { %721 = vperm.xlu1 %1115, %v1067_v33  }
  0x43   : > { %793 = vperm.xlu0 %1114, %v1070_v34  }
  0x44   : > { %788 = vperm.xlu1 %1115, %v1069_v35  }
  0x47   : > { %688 = vrot.lane.b32.xlu0 %v1313_v36, %s1145_s9 }
  0x48   : > { %798 = vperm.xlu1 %1115, %v1071_v37  }
  0x4b   : > { %844 = vperm.xlu0 %1114, %v1073_v38  }
  0x4c   : > { %839 = vperm.xlu1 %1115, %v1072_v39  }
  0x4f   : > { %854 = vperm.xlu0 %1114, %v1075_v40  }
  0x50   : > { %849 = vperm.xlu1 %1115, %v1074_v41  }
  0x54   : > { %769 = vrot.lane.b32.xlu1 %v1313_v36, %s1146_s22 }
  0x79   : > { %v313_v42 = vpop.permute.xlu0 %312 }
  0x7a   : > { %v317_v45 = vmul.f32 0.0, %v313_v42  ;;  %v316_v46 = vmul.f32 %v313_v42, %v1334_v43  ;;  %v318_v52 = vmul.f32 %v313_v42, %v1337_v47  ;;  %v320_v58 = vmul.f32 %v313_v42, %v1342_v53 }
  0x7b   : > { %v322_v0 = vmul.f32 %v313_v42, %v1347_v59 }
  0x87   : > { %v335_v44 = vpop.permute.xlu1 %334 }
  0x88   : > { %v349_v55 = vmul.f32 %v335_v44, %v317_v45  ;;  %v350_v56 = vmul.f32 %v335_v44, %v318_v52 }
  0x8a   : > { %v330_v48 = vpop.permute.xlu0 %329 }
  0x8b   : > { %v347_v49 = vmul.f32 %v330_v48, %v317_v45  ;;  %v348_v50 = vmul.f32 %v330_v48, %v316_v46  ;;  %v340_v51 = vpop.permute.xlu1 %339 }
  0x8c   : > { %v351_v61 = vmul.f32 %v340_v51, %v317_v45  ;;  %v352_v62 = vmul.f32 %v340_v51, %v320_v58 }
  0x8d   : > { %363 = vrot.lane.b32.xlu0 %v347_v49, %s1147_s25  ;;  %365 = vrot.lane.b32.xlu1 %v348_v50, %s1147_s25 }
  0x8e   : > { %v393_v54 = vpop.permute.xlu0 %392 }
  0x8f   : > { %v345_v57 = vpop.permute.xlu1 %344  ;;  %v397_v5 = vmul.f32 0.0, %v393_v54  ;;  %v396_v6 = vmul.f32 %v393_v54, %v1334_v43  ;;  %v398_v15 = vmul.f32 %v393_v54, %v1337_v47  ;;  %v400_v20 = vmul.f32 %v393_v54, %v1342_v53 }
  0x90   : > { %v353_v2 = vmul.f32 %v345_v57, %v317_v45  ;;  %v354_v3 = vmul.f32 %v345_v57, %v322_v0  ;;  %v402_v25 = vmul.f32 %v393_v54, %v1347_v59  ;;  %v1056_v0 = vld [vmem:[%s1483_s1 + $0x90] sm:$0xff] }
  0x91   : > { %367 = vrot.lane.b32.xlu0 %v349_v55, %s1147_s25  ;;  %369 = vrot.lane.b32.xlu1 %v350_v56, %s1147_s25 }
  0x92   : > { %v416_v60 = vpop.permute.xlu0 %415 }
  0x93   : > { %v411_v63 = vpop.permute.xlu1 %410  ;;  %v430_v17 = vmul.f32 %v416_v60, %v397_v5  ;;  %v431_v18 = vmul.f32 %v416_v60, %v398_v15 }
  0x94   : > { %v428_v8 = vmul.f32 %v411_v63, %v397_v5  ;;  %v429_v13 = vmul.f32 %v411_v63, %v396_v6 }
  0x95   : > { %371 = vrot.lane.b32.xlu0 %v351_v61, %s1147_s25  ;;  %373 = vrot.lane.b32.xlu1 %v352_v62, %s1147_s25 }
  0x96   : > { %v426_v1 = vpop.permute.xlu0 %425 }
  0x97   : > { %v421_v4 = vpop.permute.xlu1 %420  ;;  %v434_v27 = vmul.f32 %v426_v1, %v397_v5  ;;  %v435_v28 = vmul.f32 %v426_v1, %v402_v25  ;;  %v1057_v1 = vld [vmem:[%s1483_s1 + $0x98] sm:$0xff] }
  0x98   : > { %v432_v22 = vmul.f32 %v421_v4, %v397_v5  ;;  %v433_v23 = vmul.f32 %v421_v4, %v400_v20 }
  0x99   : > { %375 = vrot.lane.b32.xlu0 %v353_v2, %s1147_s25  ;;  %377 = vrot.lane.b32.xlu1 %v354_v3, %s1147_s25 }
  0x9a   : > { %v488_v7 = vpop.permute.xlu0 %487 }
  0x9b   : > { %v474_v14 = vpop.permute.xlu1 %473 }
  0x9c   : > { %v476_v29 = vmul.f32 %v474_v14, %v1334_v43  ;;  %v477_v30 = vmul.f32 %v474_v14, %v1337_v47  ;;  %v478_v33 = vmul.f32 %v474_v14, %v1342_v53  ;;  %v479_v38 = vmul.f32 %v474_v14, %v1347_v59 }
  0x9d   : > { %446 = vrot.lane.b32.xlu0 %v429_v13, %s1146_s22  ;;  %444 = vrot.lane.b32.xlu1 %v428_v8, %s1146_s22 }
  0x9e   : > { %v498_v16 = vpop.permute.xlu0 %497  ;;  %v505_v37 = vmul.f32 %v488_v7, %v476_v29  ;;  %v882_v29 = vld [vmem:[%s1484_s2 + $0x8] sm:$0xff] }
  0x9f   : > { %v493_v19 = vpop.permute.xlu1 %492  ;;  %v507_v40 = vmul.f32 %v498_v16, %v478_v33  ;;  %v884_v33 = vld [vmem:[%s1484_s2 + $0x18] sm:$0xff] }
  0xa0   : > { %v506_v34 = vmul.f32 %v493_v19, %v477_v30  ;;  %v883_v30 = vld [vmem:[%s1484_s2 + $0x10] sm:$0xff] }
  0xa1   : > { %450 = vrot.lane.b32.xlu0 %v431_v18, %s1146_s22  ;;  %448 = vrot.lane.b32.xlu1 %v430_v17, %s1146_s22 }
  0xa2   : > { %v537_v21 = vpop.permute.xlu0 %536 }
  0xa3   : > { %v503_v24 = vpop.permute.xlu1 %502  ;;  %v554_v45 = vmul.f32 0.0, %v537_v21  ;;  %v555_v46 = vmul.f32 %v537_v21, %v1334_v43 }
  0xa4   : > { %v508_v41 = vmul.f32 %v503_v24, %v479_v38 }
  0xa5   : > { %454 = vrot.lane.b32.xlu0 %v433_v23, %s1146_s22  ;;  %452 = vrot.lane.b32.xlu1 %v432_v22, %s1146_s22 }
  0xa6   : > { %v547_v26 = vpop.permute.xlu0 %546 }
  0xa7   : > { %v542_v31 = vpop.permute.xlu1 %541  ;;  %v558_v55 = vmul.f32 0.0, %v547_v26  ;;  %v559_v56 = vmul.f32 %v547_v26, %v1342_v53  ;;  %v881_v26 = vld [vmem:[%s1484_s2] sm:$0xff] }
  0xa8   : > { %v556_v50 = vmul.f32 0.0, %v542_v31  ;;  %v557_v51 = vmul.f32 %v542_v31, %v1337_v47 }
  0xa9   : > { %458 = vrot.lane.b32.xlu0 %v435_v28, %s1146_s22  ;;  %456 = vrot.lane.b32.xlu1 %v434_v27, %s1146_s22 }
  0xaa   : > { %v1368_v32 = vpop.permute.xlu0 %606 }
  0xab   : > { %v552_v35 = vpop.permute.xlu1 %551 }
  0xac   : > { %v560_v60 = vmul.f32 0.0, %v552_v35  ;;  %v561_v61 = vmul.f32 %v552_v35, %v1347_v59 }
  0xad   : > { %513 = vrot.lane.b32.xlu0 %v505_v37, %s1145_s9  ;;  %515 = vrot.lane.b32.xlu1 %v506_v34, %s1145_s9 }
  0xae   : > { %v640_v39 = vpop.permute.xlu0 %639 }
  0xaf   : > { %v1374_v42 = vpop.permute.xlu1 %611  ;;  %v657_v2 = vmul.f32 %v640_v39, %v1334_v43 }
  0xb1   : > { %517 = vrot.lane.b32.xlu0 %v507_v40, %s1145_s9  ;;  %519 = vrot.lane.b32.xlu1 %v508_v41, %s1145_s9 }
  0xb2   : > { %v650_v44 = vpop.permute.xlu0 %649 }
  0xb3   : > { %v645_v48 = vpop.permute.xlu1 %644  ;;  %v659_v5 = vmul.f32 %v650_v44, %v1342_v53 }
  0xb4   : > { %v658_v6 = vmul.f32 %v645_v48, %v1337_v47 }
  0xb5   : > { %570 = vrot.lane.b32.xlu0 %v554_v45, %s1148_s26  ;;  %572 = vrot.lane.b32.xlu1 %v555_v46, %s1148_s26 }
  0xb6   : > { %v707_v49 = vpop.permute.xlu0 %706 }
  0xb7   : > { %v655_v52 = vpop.permute.xlu1 %654 }
  0xb8   : > { %v660_v8 = vmul.f32 %v655_v52, %v1347_v59 }
  0xb9   : > { %574 = vrot.lane.b32.xlu0 %v556_v50, %s1148_s26  ;;  %576 = vrot.lane.b32.xlu1 %v557_v51, %s1148_s26 }
  0xba   : > { %v717_v54 = vpop.permute.xlu0 %716 }
  0xbb   : > { %v712_v57 = vpop.permute.xlu1 %711 }
  0xbd   : > { %578 = vrot.lane.b32.xlu0 %v558_v55, %s1148_s26  ;;  %580 = vrot.lane.b32.xlu1 %v559_v56, %s1148_s26 }
  0xbe   : > { %v784_v58 = vpop.permute.xlu0 %783 }
  0xbf   : > { %v722_v62 = vpop.permute.xlu1 %721 }
  0xc1   : > { %582 = vrot.lane.b32.xlu0 %v560_v60, %s1148_s26  ;;  %584 = vrot.lane.b32.xlu1 %v561_v61, %s1148_s26 }
  0xc2   : > { %v794_v63 = vpop.permute.xlu0 %793 }
  0xc3   : > { %v789_v3 = vpop.permute.xlu1 %788 }
  0xc5   : > { %825 = vrot.lane.b32.xlu0 %v1313_v36, %s1147_s25  ;;  %616 = vperm.xlu1 %1115, %v1056_v0  }
  0xc6   : > { %v689_v4 = vpop.permute.xlu0 %688 }
  0xc7   : > { %v691_v7 = vmul.f32 0.0, %v689_v4  ;;  %v799_v36 = vpop.permute.xlu1 %798  ;;  %v692_v14 = vmul.f32 %v689_v4, %v1334_v43  ;;  %v694_v17 = vmul.f32 %v689_v4, %v1337_v47  ;;  %v696_v21 = vmul.f32 %v689_v4, %v1342_v53 }
  0xc8   : > { %v698_v25 = vmul.f32 %v689_v4, %v1347_v59 }
  0xc9   : > { %621 = vperm.xlu0 %1114, %v1057_v1   ;;  %665 = vrot.lane.b32.xlu1 %v657_v2, %s1149_s7  ;;  %v724_v13 = vmul.f32 %v707_v49, %v691_v7  ;;  %v725_v15 = vmul.f32 %v707_v49, %v692_v14  ;;  %v726_v16 = vmul.f32 %v712_v57, %v691_v7 }
  0xca   : > { %v727_v19 = vmul.f32 %v712_v57, %v694_v17  ;;  %v728_v20 = vmul.f32 %v717_v54, %v691_v7  ;;  %v729_v23 = vmul.f32 %v717_v54, %v696_v21  ;;  %v730_v24 = vmul.f32 %v722_v62, %v691_v7  ;;  %v1430_v44 = vpop.permute.xlu0 %844 }
  0xcb   : > { %v1397_v18 = vpop.permute.xlu1 %839  ;;  %v731_v27 = vmul.f32 %v722_v62, %v698_v25 }
  0xcd   : > { %667 = vrot.lane.b32.xlu0 %v658_v6, %s1149_s7  ;;  %669 = vrot.lane.b32.xlu1 %v659_v5, %s1149_s7 }
  0xce   : > { %v1432_v45 = vpop.permute.xlu0 %854 }
  0xcf   : > { %v1404_v22 = vpop.permute.xlu1 %849 }
  0xd1   : > { %671 = vrot.lane.b32.xlu0 %v660_v8, %s1149_s7  ;;  %740 = vrot.lane.b32.xlu1 %v724_v13, %s1144_s24 }
  0xd3   : > { %v770_v28 = vpop.permute.xlu1 %769 }
  0xd4   : > { %v772_v31 = vmul.f32 %v770_v28, %v1334_v43  ;;  %v773_v34 = vmul.f32 %v770_v28, %v1337_v47  ;;  %v774_v35 = vmul.f32 %v770_v28, %v1342_v53  ;;  %v775_v38 = vmul.f32 %v770_v28, %v1347_v59 }
  0xd5   : > { %742 = vrot.lane.b32.xlu0 %v725_v15, %s1144_s24  ;;  %744 = vrot.lane.b32.xlu1 %v726_v16, %s1144_s24 }
  0xd6   : > { %v801_v37 = vmul.f32 %v784_v58, %v772_v31  ;;  %v802_v39 = vmul.f32 %v789_v3, %v773_v34  ;;  %v803_v40 = vmul.f32 %v794_v63, %v774_v35  ;;  %v804_v41 = vmul.f32 %v799_v36, %v775_v38 }
  0xd7   : > { %v624_v31 = vmul.f32 %v1368_v32, %v1226_v10 }
  0xd9   : > { %746 = vrot.lane.b32.xlu0 %v727_v19, %s1144_s24  ;;  %748 = vrot.lane.b32.xlu1 %v728_v20, %s1144_s24 }
  0xdd   : > { %750 = vrot.lane.b32.xlu0 %v729_v23, %s1144_s24  ;;  %752 = vrot.lane.b32.xlu1 %v730_v24, %s1144_s24 }
  0xe1   : > { %754 = vrot.lane.b32.xlu0 %v731_v27, %s1144_s24  ;;  %887 = vperm.xlu1 %1115, %v881_v26   ;;  %s279_s24 = scalar_lea.vmem %s1486_s4, %s1078_s30 }
  0xe5   : > { %892 = vperm.xlu0 %1114, %v882_v29   ;;  %897 = vperm.xlu1 %1115, %v883_v30  }
  0xe9   : > { %902 = vperm.xlu0 %1114, %v884_v33   ;;  %809 = vrot.lane.b32.xlu1 %v801_v37, %s1143_s5 }
  0xed   : > { %811 = vrot.lane.b32.xlu0 %v802_v39, %s1143_s5  ;;  %813 = vrot.lane.b32.xlu1 %v803_v40, %s1143_s5  ;;  %v625_v40 = vmul.f32 %v1374_v42, %v1224_v9 }
  0xf1   : > { %815 = vrot.lane.b32.xlu0 %v804_v41, %s1143_s5 }
  0xff   : > { %v364_v46 = vpop.permute.xlu0 %363  ;;  %v366_v48 = vpop.permute.xlu1 %365 }
 0x100   : > { %v380_v49 = vsel %vm379_vm1, %v364_v46, %v366_v48 }
 0x101   : > { %v388_v61 = vadd.f32 %v380_v49, %v1226_v10 }
 0x103   : > { %v368_v50 = vpop.permute.xlu0 %367  ;;  %v370_v51 = vpop.permute.xlu1 %369 }
 0x104   : > { %v381_v52 = vsel %vm379_vm1, %v368_v50, %v370_v51 }
 0x105   : > { %v389_v2 = vadd.f32 %v381_v52, %v1224_v9 }
 0x107   : > { %v372_v54 = vpop.permute.xlu0 %371  ;;  %v374_v55 = vpop.permute.xlu1 %373 }
 0x108   : > { %v382_v56 = vsel %vm379_vm1, %v372_v54, %v374_v55 }
 0x109   : > { %v390_v7 = vadd.f32 %v382_v56, %v1228_v11 }
 0x10b   : > { %v376_v57 = vpop.permute.xlu0 %375  ;;  %v378_v58 = vpop.permute.xlu1 %377 }
 0x10c   : > { %v383_v60 = vsel %vm379_vm1, %v376_v57, %v378_v58 }
 0x10d   : > { %v391_v15 = vadd.f32 %v383_v60, %v1236_v12 }
 0x10f   : > { %v447_v62 = vpop.permute.xlu0 %446  ;;  %v445_v63 = vpop.permute.xlu1 %444 }
 0x110   : > { %v461_v0 = vsel %vm460_vm2, %v445_v63, %v447_v62 }
 0x111   : > { %v469_v1 = vadd.f32 %v461_v0, %v388_v61 }
 0x113   : > { %v451_v3 = vpop.permute.xlu0 %450  ;;  %v449_v4 = vpop.permute.xlu1 %448 }
 0x114   : > { %v462_v5 = vsel %vm460_vm2, %v449_v4, %v451_v3 }
 0x115   : > { %v470_v6 = vadd.f32 %v462_v5, %v389_v2 }
 0x117   : > { %v455_v36 = vpop.permute.xlu0 %454  ;;  %v453_v8 = vpop.permute.xlu1 %452 }
 0x118   : > { %v463_v13 = vsel %vm460_vm2, %v453_v8, %v455_v36 }
 0x119   : > { %v471_v14 = vadd.f32 %v463_v13, %v390_v7 }
 0x11b   : > { %v459_v16 = vpop.permute.xlu0 %458  ;;  %v457_v17 = vpop.permute.xlu1 %456 }
 0x11c   : > { %v464_v19 = vsel %vm460_vm2, %v457_v17, %v459_v16 }
 0x11d   : > { %v472_v20 = vadd.f32 %v464_v19, %v391_v15 }
 0x11f   : > { %v514_v21 = vpop.permute.xlu0 %513  ;;  %v516_v23 = vpop.permute.xlu1 %515 }
 0x120   : > { %v525_v24 = vadd.f32 %v514_v21, %v469_v1  ;;  %v526_v34 = vadd.f32 %v516_v23, %v470_v6 }
 0x123   : > { %v518_v25 = vpop.permute.xlu0 %517  ;;  %v520_v26 = vpop.permute.xlu1 %519 }
 0x124   : > { %v527_v27 = vadd.f32 %v518_v25, %v471_v14  ;;  %v528_v52 = vadd.f32 %v520_v26, %v472_v20 }
 0x127   : > { %v571_v28 = vpop.permute.xlu0 %570  ;;  %v573_v29 = vpop.permute.xlu1 %572 }
 0x128   : > { %v587_v30 = vsel %vm586_vm3, %v571_v28, %v573_v29 }
 0x129   : > { %v595_v33 = vadd.f32 %v587_v30, %v525_v24 }
 0x12b   : > { %v575_v35 = vpop.permute.xlu0 %574  ;;  %v577_v37 = vpop.permute.xlu1 %576  ;;  %v628_v38 = vadd.f32 %v624_v31, %v595_v33 }
 0x12c   : > { %v588_v39 = vsel %vm586_vm3, %v575_v35, %v577_v37 }
 0x12d   : > { %v596_v41 = vadd.f32 %v588_v39, %v526_v34 }
 0x12f   : > { %v579_v46 = vpop.permute.xlu0 %578  ;;  %v581_v48 = vpop.permute.xlu1 %580  ;;  %v629_v49 = vadd.f32 %v625_v40, %v596_v41 }
 0x130   : > { %v589_v50 = vsel %vm586_vm3, %v579_v46, %v581_v48 }
 0x131   : > { %v597_v51 = vadd.f32 %v589_v50, %v527_v27 }
 0x133   : > { %v583_v54 = vpop.permute.xlu0 %582  ;;  %v585_v10 = vpop.permute.xlu1 %584 }
 0x134   : > { %v590_v32 = vsel %vm586_vm3, %v583_v54, %v585_v10 }
 0x135   : > { %v598_v55 = vadd.f32 %v590_v32, %v528_v52 }
 0x137   : > { %v826_v56 = vpop.permute.xlu0 %825 }
 0x138   : > { %v828_v57 = vmul.f32 %v826_v56, %v1334_v43  ;;  %v829_v58 = vmul.f32 %v826_v56, %v1337_v47  ;;  %v830_v9 = vmul.f32 %v826_v56, %v1342_v53  ;;  %v831_v42 = vmul.f32 %v826_v56, %v1347_v59 }
 0x13a   : > { %v858_v60 = vmul.f32 %v1430_v44, %v829_v58  ;;  %v857_v61 = vmul.f32 %v1397_v18, %v828_v57  ;;  %v860_v62 = vmul.f32 %v1432_v45, %v831_v42  ;;  %v859_v63 = vmul.f32 %v1404_v22, %v830_v9 }
 0x13c   : > { %867 = vrot.lane.b32.xlu0 %v858_v60, %s1141_s23  ;;  %865 = vrot.lane.b32.xlu1 %v857_v61, %s1141_s23 }
 0x140   : > { %871 = vrot.lane.b32.xlu0 %v860_v62, %s1141_s23  ;;  %869 = vrot.lane.b32.xlu1 %v859_v63, %s1141_s23 }
 0x144   : > { %v617_v43 = vpop.permute.xlu1 %616 }
 0x145   : > { %v626_v15 = vmul.f32 %v617_v43, %v1228_v11 }
 0x147   : > { %v630_v25 = vadd.f32 %v626_v15, %v597_v51 }
 0x148   : > { %v622_v47 = vpop.permute.xlu0 %621  ;;  %v666_v53 = vpop.permute.xlu1 %665 }
 0x149   : > { %v627_v16 = vmul.f32 %v622_v47, %v1236_v12  ;;  %v677_v20 = vadd.f32 %v666_v53, %v628_v38 }
 0x14b   : > { %v631_v26 = vadd.f32 %v627_v16, %v598_v55 }
 0x14c   : > { %v668_v59 = vpop.permute.xlu0 %667  ;;  %v670_v0 = vpop.permute.xlu1 %669 }
 0x14d   : > { %v678_v21 = vadd.f32 %v668_v59, %v629_v49  ;;  %v679_v31 = vadd.f32 %v670_v0, %v630_v25 }
 0x150   : > { %v672_v44 = vpop.permute.xlu0 %671  ;;  %v741_v1 = vpop.permute.xlu1 %740 }
 0x151   : > { %v680_v33 = vadd.f32 %v672_v44, %v631_v26 }
 0x154   : > { %v743_v18 = vpop.permute.xlu0 %742  ;;  %v745_v2 = vpop.permute.xlu1 %744 }
 0x155   : > { %v757_v17 = vsel %vm756_vm4, %v741_v1, %v743_v18 }
 0x156   : > { %v765_v27 = vadd.f32 %v757_v17, %v677_v20 }
 0x158   : > { %v747_v3 = vpop.permute.xlu0 %746  ;;  %v749_v4 = vpop.permute.xlu1 %748 }
 0x159   : > { %v758_v19 = vsel %vm756_vm4, %v745_v2, %v747_v3 }
 0x15a   : > { %v766_v28 = vadd.f32 %v758_v19, %v678_v21 }
 0x15c   : > { %v751_v5 = vpop.permute.xlu0 %750  ;;  %v753_v6 = vpop.permute.xlu1 %752 }
 0x15d   : > { %v759_v29 = vsel %vm756_vm4, %v749_v4, %v751_v5 }
 0x15e   : > { %v767_v12 = vadd.f32 %v759_v29, %v679_v31 }
 0x160   : > { %v755_v45 = vpop.permute.xlu0 %754  ;;  %v888_v7 = vpop.permute.xlu1 %887 }
 0x161   : > { %v760_v30 = vsel %vm756_vm4, %v753_v6, %v755_v45 }
 0x162   : > { %v768_v39 = vadd.f32 %v760_v30, %v680_v33 }
 0x164   : > { %v893_v22 = vpop.permute.xlu0 %892  ;;  %v898_v36 = vpop.permute.xlu1 %897 }
 0x168   : > { %v903_v8 = vpop.permute.xlu0 %902  ;;  %v810_v13 = vpop.permute.xlu1 %809 }
 0x169   : > { %v821_v34 = vadd.f32 %v810_v13, %v765_v27 }
 0x16c   : > { %v812_v14 = vpop.permute.xlu0 %811  ;;  %v814_v23 = vpop.permute.xlu1 %813 }
 0x16d   : > { %v822_v35 = vadd.f32 %v812_v14, %v766_v28  ;;  %v823_v41 = vadd.f32 %v814_v23, %v767_v12 }
 0x170   : > { %v816_v24 = vpop.permute.xlu0 %815 }
 0x171   : > { %v824_v46 = vadd.f32 %v816_v24, %v768_v39 }
 0x1ae   : > { %v868_v11 = vpop.permute.xlu0 %867  ;;  %v866_v37 = vpop.permute.xlu1 %865 }
 0x1af   : > { %v878_v40 = vadd.f32 %v868_v11, %v822_v35  ;;  %v877_v38 = vadd.f32 %v866_v37, %v821_v34 }
 0x1b1   : > { %v906_v48 = vadd.f32 %v893_v22, %v878_v40  ;;  %v905_v49 = vadd.f32 %v888_v7, %v877_v38 }
 0x1b2   : > { %v872_v50 = vpop.permute.xlu0 %871  ;;  %v870_v51 = vpop.permute.xlu1 %869 }
 0x1b3   : > { %910 = vst.msk [vmem:[%s279_s24 + $0x8] sm:$0xff] %vm293_vm0, %v906_v48  ;;  %909 = vst.msk [vmem:[%s279_s24] sm:$0xff] %vm293_vm0, %v905_v49  ;;  %v880_v52 = vadd.f32 %v872_v50, %v824_v46  ;;  %v879_v54 = vadd.f32 %v870_v51, %v823_v41 }
 0x1b5   : > { %v908_v10 = vadd.f32 %v903_v8, %v880_v52  ;;  %v907_v32 = vadd.f32 %v898_v36, %v879_v54 }
 0x1b7   : > { %912 = vst.msk [vmem:[%s279_s24 + $0x18] sm:$0xff] %vm293_vm0, %v908_v10  ;;  %911 = vst.msk [vmem:[%s279_s24 + $0x10] sm:$0xff] %vm293_vm0, %v907_v32 }
 0x1b8 PF: > { %s14_s17 = sadd.s32 1, %s1138_s17   ;;  %s1487_s15 = smov %s1134_s16 }
 0x1b9   : > { %p11_p5 = scmp.ge.s32.totalorder %s14_s17, 4   ;;  %s1488_s16 = smov %s1490_s18 }
 0x1bb   :  { %13 = sbr.rel (!%p11_p5) target bundleno = 2 (0x2), region = 81 }

</bundles_post_ra>
